<compile_context>
chip_gen: v5e
topology: v5e:2x2
jax: 0.10.0
libtpu: 0.0.40
codegen_flags: <defaults>
</compile_context>

<pallas_src>
import functools

import jax
import jax.numpy as jnp
from jax.experimental import pallas as pl
from jax.experimental.pallas import tpu as pltpu


# ----------------------------------------------------------------------------
# Kernels
# ----------------------------------------------------------------------------
def _content_partial_kernel(c_ref, o_ref, out_ref, acc_ref):
    """Accumulate sum((c - o)^2) across row tiles; emit per-group partial sum.

    The sqrt is deliberately NOT applied here -- it must only be taken after
    the full cross-tile / cross-group accumulation (done in the wrapper).
    """
    k = pl.program_id(1)

    @pl.when(k == 0)
    def _():
        acc_ref[...] = jnp.zeros_like(acc_ref)

    d = c_ref[...].astype(jnp.float32) - o_ref[...].astype(jnp.float32)
    acc_ref[...] += jnp.sum(d * d, axis=(0, 1), keepdims=True)

    @pl.when(k == pl.num_programs(1) - 1)
    def _():
        out_ref[...] = acc_ref[...]


def _style_partial_kernel(s_ref, o_ref, mu_out_ref, sig_out_ref,
                          mu_acc_ref, sig_acc_ref):
    """Per row tile: mu / sigma over the full H*W lane axis, then accumulate
    sum((mu_s - mu_o)^2) and sum((sigma_s - sigma_o)^2).

    Rows (n, c pairs) are independent, so row tiling needs no streaming
    statistics.  sigma is the biased, epsilon-free sqrt(var), matching the
    PyTorch reference.  Final sqrt of both accumulators is deferred to the
    wrapper.
    """
    k = pl.program_id(1)

    @pl.when(k == 0)
    def _():
        mu_acc_ref[...] = jnp.zeros_like(mu_acc_ref)
        sig_acc_ref[...] = jnp.zeros_like(sig_acc_ref)

    s = s_ref[...].astype(jnp.float32)
    o = o_ref[...].astype(jnp.float32)
    inv_hw = 1.0 / s.shape[1]

    mu_s = jnp.sum(s, axis=1, keepdims=True) * inv_hw          # (rows, 1)
    mu_o = jnp.sum(o, axis=1, keepdims=True) * inv_hw
    var_s = jnp.sum((s - mu_s) ** 2, axis=1, keepdims=True) * inv_hw
    var_o = jnp.sum((o - mu_o) ** 2, axis=1, keepdims=True) * inv_hw

    dmu = mu_s - mu_o
    dsig = jnp.sqrt(var_s) - jnp.sqrt(var_o)

    mu_acc_ref[...] += jnp.sum(dmu * dmu, axis=(0, 1), keepdims=True)
    sig_acc_ref[...] += jnp.sum(dsig * dsig, axis=(0, 1), keepdims=True)

    @pl.when(k == pl.num_programs(1) - 1)
    def _():
        mu_out_ref[...] = mu_acc_ref[...]
        sig_out_ref[...] = sig_acc_ref[...]


# ----------------------------------------------------------------------------
# Tiling helpers
# ----------------------------------------------------------------------------
# 2 inputs x 2 pipeline buffers per tile must stay under this budget so the
# kernel fits the scoped-VMEM defaults on v5e (after raising the limit) and
# the 64 MiB physical VMEM on v7x.
_VMEM_TILE_BUDGET = 24 << 20
_VMEM_LIMIT_BYTES = 48 << 20


def _as_rows(x):
    """(N, C, H, W) -> (N*C, H*W); required layout for the style statistics."""
    n, c, h, w = x.shape
    return x.reshape(n * c, h * w)


def _lane_dense_view(x):
    """Layout-free 2D view with a lane-dense (multiple-of-128) last dim."""
    total = x.size
    for lanes in (512, 256, 128):
        if total % lanes == 0:
            return x.reshape(total // lanes, lanes)
    n, c, h, w = x.shape
    return x.reshape(n * c, h * w)


def _row_tiling(rows, lanes, itemsize):
    """Pick (block_rows, num_groups, tiles_per_group) for the row reduction."""
    bytes_per_row = lanes * itemsize * 2 * 2      # 2 inputs x double buffer
    if rows % 8 != 0 or rows * bytes_per_row <= _VMEM_TILE_BUDGET:
        # Tiny / oddly shaped arrays: one full-array tile (always legal since
        # block dims equal the full array dims).
        return rows, 1, 1
    block_rows = min(rows,
                     max(8, (_VMEM_TILE_BUDGET // bytes_per_row) // 8 * 8))
    while rows % block_rows != 0:                  # keep it a divisor, mult of 8
        block_rows -= 8
    tiles = rows // block_rows
    if tiles % 2 == 0:
        return block_rows, 2, tiles // 2           # 2 groups -> v7x megacore
    return block_rows, 1, tiles


def _grid_call(kernel, out_shapes, n_scratch, a, b, block_rows, groups, tpg):
    rows, lanes = a.shape
    in_idx = lambda g, k: (g * tpg + k, 0)
    out_idx = lambda g, k: (g, 0)
    return pl.pallas_call(
        kernel,
        out_shape=out_shapes,
        grid_spec=pltpu.PrefetchScalarGridSpec(
            num_scalar_prefetch=0,
            grid=(groups, tpg),
            in_specs=[pl.BlockSpec((block_rows, lanes), in_idx),
                      pl.BlockSpec((block_rows, lanes), in_idx)],
            out_specs=tuple(pl.BlockSpec((1, 1), out_idx)
                            for _ in range(len(out_shapes))),
            scratch_shapes=[pltpu.VMEM((1, 1), jnp.float32)] * n_scratch,
        ),
        compiler_params=pltpu.CompilerParams(
            dimension_semantics=("parallel", "arbitrary"),
            vmem_limit_bytes=_VMEM_LIMIT_BYTES),
    )(a, b)


# ----------------------------------------------------------------------------
# Loss wrappers
# ----------------------------------------------------------------------------
def _content_loss(content_emb, output_emb):
    a = _lane_dense_view(content_emb)
    b = _lane_dense_view(output_emb)
    rows, lanes = a.shape
    block_rows, groups, tpg = _row_tiling(rows, lanes,
                                          jnp.dtype(a.dtype).itemsize)
    (partials,) = _grid_call(
        _content_partial_kernel,
        (jax.ShapeDtypeStruct((groups, 1), jnp.float32),),
        1, a, b, block_rows, groups, tpg)
    return jnp.sqrt(jnp.sum(partials))


def _style_loss(style_act, output_act):
    a = _as_rows(style_act)
    b = _as_rows(output_act)
    rows, lanes = a.shape
    block_rows, groups, tpg = _row_tiling(rows, lanes,
                                          jnp.dtype(a.dtype).itemsize)
    mu_p, sig_p = _grid_call(
        _style_partial_kernel,
        (jax.ShapeDtypeStruct((groups, 1), jnp.float32),
         jax.ShapeDtypeStruct((groups, 1), jnp.float32)),
        2, a, b, block_rows, groups, tpg)
    return jnp.sqrt(jnp.sum(mu_p)) + jnp.sqrt(jnp.sum(sig_p))


@functools.partial(jax.jit, static_argnames=("lambda_",))
def adain_loss(content_emb, output_emb, style_activations, output_activations,
               lambda_):
    n_batch = content_emb.shape[0]

    content_loss = _content_loss(content_emb, output_emb)

    # PyTorch loop overwrites mu_sum / sigma_sum each iteration (`=` not `+=`),
    # so only the last (style, output) pair contributes to the style loss.
    style_loss = _style_loss(style_activations[-1], output_activations[-1])

    return (content_loss + lambda_ * style_loss) / n_batch


# ----------------------------------------------------------------------------
# Pure-JAX reference (for correctness check only)
# ----------------------------------------------------------------------------
def _mu_ref(x):
    return jnp.sum(x, axis=(2, 3)) / (x.shape[2] * x.shape[3])


def _sigma_ref(x):
    m = _mu_ref(x)[:, :, None, None]
    return jnp.sqrt(jnp.sum((x - m) ** 2, axis=(2, 3)) /
                    (x.shape[2] * x.shape[3]))


def adain_loss_ref(content_emb, output_emb, style_acts, output_acts, lambda_):
    content_loss = jnp.sqrt(jnp.sum((content_emb - output_emb) ** 2))
    mu_sum = 0.0
    sigma_sum = 0.0
    for s, o in zip(style_acts, output_acts):
        mu_sum = jnp.sqrt(jnp.sum((_mu_ref(s) - _mu_ref(o)) ** 2))
        sigma_sum = jnp.sqrt(jnp.sum((_sigma_ref(s) - _sigma_ref(o)) ** 2))
    style_loss = mu_sum + sigma_sum
    return (content_loss + lambda_ * style_loss) / content_emb.shape[0]


# ----------------------------------------------------------------------------
# Main
# ----------------------------------------------------------------------------
if __name__ == "__main__":
    key = jax.random.PRNGKey(0)
    k = jax.random.split(key, 8)

    lambda_ = 10.0

    # content / output embeddings: (N, C, H, W) = (2, 4, 16, 16)
    content_emb = jax.random.normal(k[0], (2, 4, 16, 16), jnp.float32)
    output_emb = jax.random.normal(k[1], (2, 4, 16, 16), jnp.float32)

    # encoder activation lists (3 stages, varying channel/spatial sizes)
    act_shapes = [(2, 4, 16, 16), (2, 8, 8, 8), (2, 8, 8, 8)]
    style_activations = tuple(
        jax.random.normal(k[2 + i], s, jnp.float32)
        for i, s in enumerate(act_shapes))
    output_activations = tuple(
        jax.random.normal(k[5 + i], s, jnp.float32)
        for i, s in enumerate(act_shapes))

    loss = adain_loss(content_emb, output_emb, style_activations,
                      output_activations, lambda_)
    loss = jax.block_until_ready(loss)

    ref = adain_loss_ref(content_emb, output_emb, style_activations,
                         output_activations, lambda_)

    assert jnp.allclose(loss, ref, rtol=1e-5, atol=1e-5), (loss, ref)
    print("KERNEL_OK")
</pallas_src>

<mosaic_0001>
module attributes {stable_mosaic.version = 11 : i64} {
  func.func @_style_partial_kernel(%arg0: i32, %arg1: i32, %arg2: memref<16x64xf32, #tpu.memory_space<vmem>>, %arg3: memref<16x64xf32, #tpu.memory_space<vmem>>, %arg4: memref<1x1xf32, #tpu.memory_space<vmem>>, %arg5: memref<1x1xf32, #tpu.memory_space<vmem>>, %arg6: memref<1x1xf32, #tpu.memory_space<vmem>>, %arg7: memref<1x1xf32, #tpu.memory_space<vmem>>) attributes {dimension_semantics = [#tpu.dimension_semantics<parallel>, #tpu.dimension_semantics<arbitrary>], iteration_bounds = array<i64: 1, 1>, scalar_prefetch = 0 : i64, scratch_operands = 2 : i64, tpu.core_type = #tpu.core_type<tc>, window_params = [{transform_indices = @transform_0, window_bounds = array<i64: 16, 64>}, {transform_indices = @transform_1, window_bounds = array<i64: 16, 64>}, {transform_indices = @transform_2, window_bounds = array<i64: 1, 1>}, {transform_indices = @transform_3, window_bounds = array<i64: 1, 1>}]} {
    %c0_i32 = arith.constant 0 : i32
    %0 = arith.cmpi eq, %arg1, %c0_i32 : i32
    %1 = arith.extui %0 : i1 to i32
    %c0_i32_0 = arith.constant 0 : i32
    %2 = arith.cmpi ne, %1, %c0_i32_0 : i32
    scf.if %2 {
      %cst_23 = arith.constant 0.000000e+00 : f32
      %52 = vector.broadcast %cst_23 : f32 to vector<1x1xf32>
      %c0_24 = arith.constant 0 : index
      %c0_25 = arith.constant 0 : index
      %53 = vector.load %arg6[%c0_24, %c0_25] : memref<1x1xf32, #tpu.memory_space<vmem>>, vector<1x1xf32>
      tpu.vector_store %arg6[%c0_24, %c0_25], %52 {strides = array<i32>} : memref<1x1xf32, #tpu.memory_space<vmem>>, vector<1x1xf32>,
      %cst_26 = arith.constant 0.000000e+00 : f32
      %54 = vector.broadcast %cst_26 : f32 to vector<1x1xf32>
      %c0_27 = arith.constant 0 : index
      %c0_28 = arith.constant 0 : index
      %55 = vector.load %arg7[%c0_27, %c0_28] : memref<1x1xf32, #tpu.memory_space<vmem>>, vector<1x1xf32>
      tpu.vector_store %arg7[%c0_27, %c0_28], %54 {strides = array<i32>} : memref<1x1xf32, #tpu.memory_space<vmem>>, vector<1x1xf32>,
    } else {
    }
    %c0 = arith.constant 0 : index
    %c0_1 = arith.constant 0 : index
    %3 = vector.load %arg2[%c0, %c0_1] : memref<16x64xf32, #tpu.memory_space<vmem>>, vector<16x64xf32>
    %c0_2 = arith.constant 0 : index
    %c0_3 = arith.constant 0 : index
    %4 = vector.load %arg3[%c0_2, %c0_3] : memref<16x64xf32, #tpu.memory_space<vmem>>, vector<16x64xf32>
    %cst = arith.constant dense<0.000000e+00> : vector<16xf32>
    %5 = vector.multi_reduction <add>, %3, %cst [1] : vector<16x64xf32> to vector<16xf32>
    %6 = vector.shape_cast %5 : vector<16xf32> to vector<16x1xf32>
    %cst_4 = arith.constant 1.562500e-02 : f32
    %7 = vector.broadcast %cst_4 : f32 to vector<16x1xf32>
    %8 = arith.mulf %6, %7 : vector<16x1xf32>
    %cst_5 = arith.constant dense<0.000000e+00> : vector<16xf32>
    %9 = vector.multi_reduction <add>, %4, %cst_5 [1] : vector<16x64xf32> to vector<16xf32>
    %10 = vector.shape_cast %9 : vector<16xf32> to vector<16x1xf32>
    %cst_6 = arith.constant 1.562500e-02 : f32
    %11 = vector.broadcast %cst_6 : f32 to vector<16x1xf32>
    %12 = arith.mulf %10, %11 : vector<16x1xf32>
    %13 = vector.broadcast %8 : vector<16x1xf32> to vector<16x64xf32>
    %14 = arith.subf %3, %13 : vector<16x64xf32>
    %15 = arith.mulf %14, %14 : vector<16x64xf32>
    %cst_7 = arith.constant dense<0.000000e+00> : vector<16xf32>
    %16 = vector.multi_reduction <add>, %15, %cst_7 [1] : vector<16x64xf32> to vector<16xf32>
    %17 = vector.shape_cast %16 : vector<16xf32> to vector<16x1xf32>
    %cst_8 = arith.constant 1.562500e-02 : f32
    %18 = vector.broadcast %cst_8 : f32 to vector<16x1xf32>
    %19 = arith.mulf %17, %18 : vector<16x1xf32>
    %20 = vector.broadcast %12 : vector<16x1xf32> to vector<16x64xf32>
    %21 = arith.subf %4, %20 : vector<16x64xf32>
    %22 = arith.mulf %21, %21 : vector<16x64xf32>
    %cst_9 = arith.constant dense<0.000000e+00> : vector<16xf32>
    %23 = vector.multi_reduction <add>, %22, %cst_9 [1] : vector<16x64xf32> to vector<16xf32>
    %24 = vector.shape_cast %23 : vector<16xf32> to vector<16x1xf32>
    %cst_10 = arith.constant 1.562500e-02 : f32
    %25 = vector.broadcast %cst_10 : f32 to vector<16x1xf32>
    %26 = arith.mulf %24, %25 : vector<16x1xf32>
    %27 = arith.subf %8, %12 : vector<16x1xf32>
    %28 = math.sqrt %19 : vector<16x1xf32>
    %29 = math.sqrt %26 : vector<16x1xf32>
    %30 = arith.subf %28, %29 : vector<16x1xf32>
    %c0_11 = arith.constant 0 : index
    %c0_12 = arith.constant 0 : index
    %31 = vector.load %arg6[%c0_11, %c0_12] : memref<1x1xf32, #tpu.memory_space<vmem>>, vector<1x1xf32>
    %32 = arith.mulf %27, %27 : vector<16x1xf32>
    %33 = vector.shape_cast %32 : vector<16x1xf32> to vector<1x16x1xf32>
    %cst_13 = arith.constant dense<0.000000e+00> : vector<1xf32>
    %34 = vector.multi_reduction <add>, %33, %cst_13 [1, 2] : vector<1x16x1xf32> to vector<1xf32>
    %35 = vector.shape_cast %34 : vector<1xf32> to vector<1x1x1xf32>
    %36 = vector.extract %35[0, 0, 0] : f32 from vector<1x1x1xf32>
    %37 = vector.broadcast %36 : f32 to vector<1x1xf32>
    %38 = arith.addf %31, %37 : vector<1x1xf32>
    %c0_14 = arith.constant 0 : index
    %c0_15 = arith.constant 0 : index
    %39 = vector.load %arg6[%c0_14, %c0_15] : memref<1x1xf32, #tpu.memory_space<vmem>>, vector<1x1xf32>
    tpu.vector_store %arg6[%c0_14, %c0_15], %38 {strides = array<i32>} : memref<1x1xf32, #tpu.memory_space<vmem>>, vector<1x1xf32>,
    %c0_16 = arith.constant 0 : index
    %c0_17 = arith.constant 0 : index
    %40 = vector.load %arg7[%c0_16, %c0_17] : memref<1x1xf32, #tpu.memory_space<vmem>>, vector<1x1xf32>
    %41 = arith.mulf %30, %30 : vector<16x1xf32>
    %42 = vector.shape_cast %41 : vector<16x1xf32> to vector<1x16x1xf32>
    %cst_18 = arith.constant dense<0.000000e+00> : vector<1xf32>
    %43 = vector.multi_reduction <add>, %42, %cst_18 [1, 2] : vector<1x16x1xf32> to vector<1xf32>
    %44 = vector.shape_cast %43 : vector<1xf32> to vector<1x1x1xf32>
    %45 = vector.extract %44[0, 0, 0] : f32 from vector<1x1x1xf32>
    %46 = vector.broadcast %45 : f32 to vector<1x1xf32>
    %47 = arith.addf %40, %46 : vector<1x1xf32>
    %c0_19 = arith.constant 0 : index
    %c0_20 = arith.constant 0 : index
    %48 = vector.load %arg7[%c0_19, %c0_20] : memref<1x1xf32, #tpu.memory_space<vmem>>, vector<1x1xf32>
    tpu.vector_store %arg7[%c0_19, %c0_20], %47 {strides = array<i32>} : memref<1x1xf32, #tpu.memory_space<vmem>>, vector<1x1xf32>,
    %c0_i32_21 = arith.constant 0 : i32
    %49 = arith.cmpi eq, %arg1, %c0_i32_21 : i32
    %50 = arith.extui %49 : i1 to i32
    %c0_i32_22 = arith.constant 0 : i32
    %51 = arith.cmpi ne, %50, %c0_i32_22 : i32
    scf.if %51 {
      %c0_23 = arith.constant 0 : index
      %c0_24 = arith.constant 0 : index
      %52 = vector.load %arg6[%c0_23, %c0_24] : memref<1x1xf32, #tpu.memory_space<vmem>>, vector<1x1xf32>
      %c0_25 = arith.constant 0 : index
      %c0_26 = arith.constant 0 : index
      %53 = vector.load %arg4[%c0_25, %c0_26] : memref<1x1xf32, #tpu.memory_space<vmem>>, vector<1x1xf32>
      tpu.vector_store %arg4[%c0_25, %c0_26], %52 {strides = array<i32>} : memref<1x1xf32, #tpu.memory_space<vmem>>, vector<1x1xf32>,
      %c0_27 = arith.constant 0 : index
      %c0_28 = arith.constant 0 : index
      %54 = vector.load %arg7[%c0_27, %c0_28] : memref<1x1xf32, #tpu.memory_space<vmem>>, vector<1x1xf32>
      %c0_29 = arith.constant 0 : index
      %c0_30 = arith.constant 0 : index
      %55 = vector.load %arg5[%c0_29, %c0_30] : memref<1x1xf32, #tpu.memory_space<vmem>>, vector<1x1xf32>
      tpu.vector_store %arg5[%c0_29, %c0_30], %54 {strides = array<i32>} : memref<1x1xf32, #tpu.memory_space<vmem>>, vector<1x1xf32>,
    } else {
    }
    return
  }
  func.func @transform_0(%arg0: i32, %arg1: i32) -> (i32, i32) {
    %c1_i32 = arith.constant 1 : i32
    %0 = arith.muli %arg0, %c1_i32 : i32
    %1 = arith.addi %0, %arg1 : i32
    %c0_i32 = arith.constant 0 : i32
    %c0_i32_0 = arith.constant 0 : i32
    return %1, %c0_i32 : i32, i32
  }
  func.func @transform_1(%arg0: i32, %arg1: i32) -> (i32, i32) {
    %c1_i32 = arith.constant 1 : i32
    %0 = arith.muli %arg0, %c1_i32 : i32
    %1 = arith.addi %0, %arg1 : i32
    %c0_i32 = arith.constant 0 : i32
    %c0_i32_0 = arith.constant 0 : i32
    return %1, %c0_i32 : i32, i32
  }
  func.func @transform_2(%arg0: i32, %arg1: i32) -> (i32, i32) {
    %c0_i32 = arith.constant 0 : i32
    %c0_i32_0 = arith.constant 0 : i32
    return %arg0, %c0_i32 : i32, i32
  }
  func.func @transform_3(%arg0: i32, %arg1: i32) -> (i32, i32) {
    %c0_i32 = arith.constant 0 : i32
    %c0_i32_0 = arith.constant 0 : i32
    return %arg0, %c0_i32 : i32, i32
  }
}

module attributes {stable_mosaic.version = 11 : i64} {
  func.func @_content_partial_kernel(%arg0: i32, %arg1: i32, %arg2: memref<4x512xf32, #tpu.memory_space<vmem>>, %arg3: memref<4x512xf32, #tpu.memory_space<vmem>>, %arg4: memref<1x1xf32, #tpu.memory_space<vmem>>, %arg5: memref<1x1xf32, #tpu.memory_space<vmem>>) attributes {dimension_semantics = [#tpu.dimension_semantics<parallel>, #tpu.dimension_semantics<arbitrary>], iteration_bounds = array<i64: 1, 1>, scalar_prefetch = 0 : i64, scratch_operands = 1 : i64, tpu.core_type = #tpu.core_type<tc>, window_params = [{transform_indices = @transform_0, window_bounds = array<i64: 4, 512>}, {transform_indices = @transform_1, window_bounds = array<i64: 4, 512>}, {transform_indices = @transform_2, window_bounds = array<i64: 1, 1>}]} {
    %c0_i32 = arith.constant 0 : i32
    %0 = arith.cmpi eq, %arg1, %c0_i32 : i32
    %1 = arith.extui %0 : i1 to i32
    %c0_i32_0 = arith.constant 0 : i32
    %2 = arith.cmpi ne, %1, %c0_i32_0 : i32
    scf.if %2 {
      %cst_10 = arith.constant 0.000000e+00 : f32
      %18 = vector.broadcast %cst_10 : f32 to vector<1x1xf32>
      %c0_11 = arith.constant 0 : index
      %c0_12 = arith.constant 0 : index
      %19 = vector.load %arg5[%c0_11, %c0_12] : memref<1x1xf32, #tpu.memory_space<vmem>>, vector<1x1xf32>
      tpu.vector_store %arg5[%c0_11, %c0_12], %18 {strides = array<i32>} : memref<1x1xf32, #tpu.memory_space<vmem>>, vector<1x1xf32>,
    } else {
    }
    %c0 = arith.constant 0 : index
    %c0_1 = arith.constant 0 : index
    %3 = vector.load %arg2[%c0, %c0_1] : memref<4x512xf32, #tpu.memory_space<vmem>>, vector<4x512xf32>
    %c0_2 = arith.constant 0 : index
    %c0_3 = arith.constant 0 : index
    %4 = vector.load %arg3[%c0_2, %c0_3] : memref<4x512xf32, #tpu.memory_space<vmem>>, vector<4x512xf32>
    %5 = arith.subf %3, %4 : vector<4x512xf32>
    %c0_4 = arith.constant 0 : index
    %c0_5 = arith.constant 0 : index
    %6 = vector.load %arg5[%c0_4, %c0_5] : memref<1x1xf32, #tpu.memory_space<vmem>>, vector<1x1xf32>
    %7 = arith.mulf %5, %5 : vector<4x512xf32>
    %8 = vector.shape_cast %7 : vector<4x512xf32> to vector<1x4x512xf32>
    %cst = arith.constant dense<0.000000e+00> : vector<1xf32>
    %9 = vector.multi_reduction <add>, %8, %cst [1, 2] : vector<1x4x512xf32> to vector<1xf32>
    %10 = vector.shape_cast %9 : vector<1xf32> to vector<1x1x1xf32>
    %11 = vector.extract %10[0, 0, 0] : f32 from vector<1x1x1xf32>
    %12 = vector.broadcast %11 : f32 to vector<1x1xf32>
    %13 = arith.addf %6, %12 : vector<1x1xf32>
    %c0_6 = arith.constant 0 : index
    %c0_7 = arith.constant 0 : index
    %14 = vector.load %arg5[%c0_6, %c0_7] : memref<1x1xf32, #tpu.memory_space<vmem>>, vector<1x1xf32>
    tpu.vector_store %arg5[%c0_6, %c0_7], %13 {strides = array<i32>} : memref<1x1xf32, #tpu.memory_space<vmem>>, vector<1x1xf32>,
    %c0_i32_8 = arith.constant 0 : i32
    %15 = arith.cmpi eq, %arg1, %c0_i32_8 : i32
    %16 = arith.extui %15 : i1 to i32
    %c0_i32_9 = arith.constant 0 : i32
    %17 = arith.cmpi ne, %16, %c0_i32_9 : i32
    scf.if %17 {
      %c0_10 = arith.constant 0 : index
      %c0_11 = arith.constant 0 : index
      %18 = vector.load %arg5[%c0_10, %c0_11] : memref<1x1xf32, #tpu.memory_space<vmem>>, vector<1x1xf32>
      %c0_12 = arith.constant 0 : index
      %c0_13 = arith.constant 0 : index
      %19 = vector.load %arg4[%c0_12, %c0_13] : memref<1x1xf32, #tpu.memory_space<vmem>>, vector<1x1xf32>
      tpu.vector_store %arg4[%c0_12, %c0_13], %18 {strides = array<i32>} : memref<1x1xf32, #tpu.memory_space<vmem>>, vector<1x1xf32>,
    } else {
    }
    return
  }
  func.func @transform_0(%arg0: i32, %arg1: i32) -> (i32, i32) {
    %c1_i32 = arith.constant 1 : i32
    %0 = arith.muli %arg0, %c1_i32 : i32
    %1 = arith.addi %0, %arg1 : i32
    %c0_i32 = arith.constant 0 : i32
    %c0_i32_0 = arith.constant 0 : i32
    return %1, %c0_i32 : i32, i32
  }
  func.func @transform_1(%arg0: i32, %arg1: i32) -> (i32, i32) {
    %c1_i32 = arith.constant 1 : i32
    %0 = arith.muli %arg0, %c1_i32 : i32
    %1 = arith.addi %0, %arg1 : i32
    %c0_i32 = arith.constant 0 : i32
    %c0_i32_0 = arith.constant 0 : i32
    return %1, %c0_i32 : i32, i32
  }
  func.func @transform_2(%arg0: i32, %arg1: i32) -> (i32, i32) {
    %c0_i32 = arith.constant 0 : i32
    %c0_i32_0 = arith.constant 0 : i32
    return %arg0, %c0_i32 : i32, i32
  }
}

</mosaic_0001>

<bundles_post_ra>
// kernel: adain_loss.3
= control target key start
LH: loop header
LB: loop body
LE: loop exit
PB: predicated region body
PF: predicated region fallthrough
CT: control target
= control target key end

     0   :  { %9 = vsyncpa [#allocation5], 0  ;;  %vm70_vm0 = vcmask 523264   ;;  %s396_s0 = inlined_call_operand.vmem [shape: f32[16,64], index: 0, kind: input, shape index: {}]   ;;  %s397_s1 = inlined_call_operand.vmem [shape: f32[16,64], index: 1, kind: input, shape index: {}]   ;;  %s398_s2 = inlined_call_operand.hbm [shape: f32[1,1], index: 2, kind: output, shape index: {0}]   ;;  %s399_s3 = inlined_call_operand.hbm [shape: f32[1,1], index: 3, kind: output, shape index: {1}]  }
   0x1   :  { %v68_v0 = vld [vmem:[%s397_s1] sm:$0xff] }
   0x2   :  { %v66_v1 = vld [vmem:[%s396_s0] sm:$0xff]  ;;  %v79_v2 = vsel %vm70_vm0, %v68_v0, 0.0 }
   0x3   :  { %v71_v3 = vsel %vm70_vm0, %v66_v1, 0.0 }
   0x4   :  { %10 = vsyncpa [#allocation7], 0  ;;  %80 = vadd.xlane.f32.xlu1 %v79_v2  ;;  %72 = vadd.xlane.f32.xlu0 %v71_v3  ;;  %v69_v4 = vld [vmem:[%s397_s1 + $0x8] sm:$0xff]  ;;  %vm166_vm1 = vcmask 7168   ;;  %vm63_vm2 = vcmask 0   ;;  %v319_v44 = vmov 0.0  }
   0x5   :  { %v67_v5 = vld [vmem:[%s396_s0 + $0x8] sm:$0xff]  ;;  %v82_v6 = vsel %vm70_vm0, %v69_v4, 0.0  ;;  %64 = vst.msk [vmem:[#allocation2] sm:$0x1] %vm63_vm2, %v319_v44  ;;  %s215_s21 = sshll.u32 %s398_s2, 4  ;;  %s320_s22 = smov [#allocation4]   ;;  %s216_s21 = int_to_ptr.hbm [resolvable:$true] %s215_s21 }
   0x6   :  { %v74_v7 = vsel %vm70_vm0, %v67_v5, 0.0  ;;  %65 = vst.msk [vmem:[#allocation3] sm:$0x1] %vm63_vm2, %v319_v44  ;;  %s213_s23 = sshll.u32 %s320_s22, 4  ;;  %s321_s2 = smov [#allocation6]   ;;  %s214_s23 = int_to_ptr.vmem [resolvable:$true] %s213_s23 }
   0x7   :  { %s224_s25 = sshll.u32 %s321_s2, 4  ;;  %s226_s28 = sshll.u32 %s399_s3, 4  ;;  %s225_s25 = int_to_ptr.vmem [resolvable:$true] %s224_s25  ;;  %s227_s28 = int_to_ptr.hbm [resolvable:$true] %s226_s28 }
   0xc   :  { %83 = vadd.xlane.f32.xlu1 %v82_v6  ;;  %75 = vadd.xlane.f32.xlu0 %v74_v7 }
  0x77   :  { %v81_v8 = vpop.xlane.xlu1 %80  ;;  %v73_v9 = vpop.xlane.xlu0 %72 }
  0x78   :  { %v85_v10 = vmul.f32 0.015625, %v81_v8  ;;  %v77_v11 = vmul.f32 0.015625, %v73_v9 }
  0x7a   :  { %v99_v12 = vsub.f32 %v68_v0, %v85_v10  ;;  %v87_v13 = vsub.f32 %v66_v1, %v77_v11  ;;  %v111_v25 = vsub.f32 %v77_v11, %v85_v10 }
  0x7c   :  { %v101_v14 = vmul.f32 %v99_v12, %v99_v12  ;;  %v89_v15 = vmul.f32 %v87_v13, %v87_v13  ;;  %v164_v31 = vmul.f32 %v111_v25, %v111_v25 }
  0x7e   :  { %v103_v16 = vsel %vm70_vm0, %v101_v14, 0.0  ;;  %v91_v17 = vsel %vm70_vm0, %v89_v15, 0.0  ;;  %v167_v33 = vsel %vm166_vm1, %v164_v31, 0.0 }
  0x7f   :  { %v84_v18 = vpop.xlane.xlu1 %83  ;;  %104 = vadd.xlane.f32.xlu0 %v103_v16  ;;  %92 = vadd.xlane.f32.xlu2 %v91_v17  ;;  %v76_v19 = vpop.xlane.xlu0 %75 }
  0x80   :  { %v86_v20 = vmul.f32 0.015625, %v84_v18  ;;  %v78_v21 = vmul.f32 0.015625, %v76_v19 }
  0x82   :  { %v100_v22 = vsub.f32 %v69_v4, %v86_v20  ;;  %v88_v23 = vsub.f32 %v67_v5, %v78_v21  ;;  %v112_v24 = vsub.f32 %v78_v21, %v86_v20 }
  0x84   :  { %v102_v26 = vmul.f32 %v100_v22, %v100_v22  ;;  %v90_v27 = vmul.f32 %v88_v23, %v88_v23  ;;  %v165_v28 = vmul.f32 %v112_v24, %v112_v24 }
  0x86   :  { %v106_v29 = vsel %vm70_vm0, %v102_v26, 0.0  ;;  %v94_v30 = vsel %vm70_vm0, %v90_v27, 0.0  ;;  %v168_v32 = vsel %vm166_vm1, %v165_v28, 0.0 }
  0x87   :  { %107 = vadd.xlane.f32.xlu1 %v106_v29  ;;  %95 = vadd.xlane.f32.xlu2 %v94_v30  ;;  %v169_v34 = vadd.f32 %v168_v32, %v167_v33 }
  0x8f   :  { %170 = vadd.xlane.f32.xlu2 %v169_v34  ;;  %v163_v34 = vld [vmem:[#allocation2] sm:$0x1] }
  0xf2   :  { %v93_v35 = vpop.xlane.xlu2 %92  ;;  %v105_v36 = vpop.xlane.xlu0 %104 }
  0xf3   :  { %v97_v37 = vmul.f32 0.015625, %v93_v35  ;;  %v109_v38 = vmul.f32 0.015625, %v105_v36 }
  0xf5   :  { %259 = vrsqrt.f32 %v97_v37  ;;  %vm120_vm3 = vcmp.eq.f32.partialorder %v97_v37, inf  ;;  %vm144_vm4 = vcmp.eq.f32.partialorder %v109_v38, inf  ;;  %v123_v8 = vand.u32 2147483648, %v97_v37 }
  0xf6   :  { %261 = vrsqrt.f32 %v109_v38  ;;  %v147_v10 = vand.u32 2147483648, %v109_v38  ;;  %vm122_vm5 = vcmp.eq.f32.partialorder %v97_v37, 0.0  ;;  %vm146_vm6 = vcmp.eq.f32.partialorder %v109_v38, 0.0 }
  0xfa   :  { %v108_v39 = vpop.xlane.xlu1 %107  ;;  %v96_v40 = vpop.xlane.xlu2 %95 }
  0xfb   :  { %v260_v41 = vpop.eup %259  ;;  %v364_v42 = vmul.f32 0.015625, %v108_v39  ;;  %v366_v43 = vmul.f32 0.015625, %v96_v40 }
  0xfc   :  { %v262_v45 = vpop.eup %261  ;;  %v114_v46 = vmul.f32 %v260_v41, %v97_v37 }
  0xfd   :  { %263 = vrsqrt.f32 %v364_v42  ;;  %v138_v48 = vmul.f32 %v262_v45, %v109_v38  ;;  %vm156_vm7 = vcmp.eq.f32.partialorder %v364_v42, inf  ;;  %v159_v21 = vand.u32 2147483648, %v364_v42 }
  0xfe   :  { %265 = vrsqrt.f32 %v366_v43  ;;  %v115_v47 = vmul.f32 %v260_v41, %v114_v46  ;;  %vm132_vm8 = vcmp.eq.f32.partialorder %v366_v43, inf  ;;  %v135_v23 = vand.u32 2147483648, %v366_v43 }
  0xff   :  { %v139_v50 = vmul.f32 %v262_v45, %v138_v48  ;;  %vm158_vm9 = vcmp.eq.f32.partialorder %v364_v42, 0.0  ;;  %vm134_vm10 = vcmp.eq.f32.partialorder %v366_v43, 0.0 }
 0x100   :  { %v116_v49 = vmul.f32 0.5, %v115_v47 }
 0x101   :  { %v140_v53 = vmul.f32 0.5, %v139_v50 }
 0x102   :  { %v171_v51 = vpop.xlane.xlu2 %170  ;;  %v117_v52 = vsub.f32 1.5, %v116_v49 }
 0x103   :  { %v264_v54 = vpop.eup %263  ;;  %v172_v55 = vrot.slane %v171_v51, 4  ;;  %v141_v58 = vsub.f32 1.5, %v140_v53 }
 0x104   :  { %v266_v56 = vpop.eup %265  ;;  %v118_v57 = vmul.f32 %v260_v41, %v117_v52  ;;  %v150_v59 = vmul.f32 %v264_v54, %v364_v42 }
 0x105   :  { %v173_v60 = vadd.f32 %v172_v55, %v171_v51  ;;  %v126_v61 = vmul.f32 %v266_v56, %v366_v43  ;;  %v142_v63 = vmul.f32 %v262_v45, %v141_v58  ;;  %v183_v45 = vld [vmem:[#allocation3] sm:$0x1] }
 0x106   :  { %v119_v62 = vmul.f32 %v118_v57, %v97_v37  ;;  %v151_v0 = vmul.f32 %v264_v54, %v150_v59 }
 0x107   :  { %v174_v1 = vrot.slane %v173_v60, 2  ;;  %v127_v2 = vmul.f32 %v266_v56, %v126_v61  ;;  %v143_v3 = vmul.f32 %v142_v63, %v109_v38 }
 0x108   :  { %v152_v4 = vmul.f32 0.5, %v151_v0  ;;  %v121_v6 = vsel %vm120_vm3, %v97_v37, %v119_v62 }
 0x109   :  { %v175_v5 = vadd.f32 %v174_v1, %v173_v60  ;;  %v128_v7 = vmul.f32 0.5, %v127_v2  ;;  %v145_v9 = vsel %vm144_vm4, %v109_v38, %v143_v3  ;;  %v124_v14 = vsel %vm122_vm5, %v123_v8, %v121_v6 }
 0x10a   :  { %v153_v11 = vsub.f32 1.5, %v152_v4  ;;  %v148_v15 = vsel %vm146_vm6, %v147_v10, %v145_v9 }
 0x10b   :  { %v176_v12 = vrot.slane %v175_v5, 1  ;;  %v129_v13 = vsub.f32 1.5, %v128_v7  ;;  %v161_v22 = vsub.f32 %v124_v14, %v148_v15 }
 0x10c   :  { %v154_v16 = vmul.f32 %v264_v54, %v153_v11 }
 0x10d   :  { %v177_v17 = vadd.f32 %v176_v12, %v175_v5  ;;  %v130_v18 = vmul.f32 %v266_v56, %v129_v13  ;;  %v184_v29 = vmul.f32 %v161_v22, %v161_v22 }
 0x10e   :  { %v155_v19 = vmul.f32 %v154_v16, %v364_v42 }
 0x10f   :  { %252 = vpush %v177_v17  ;;  %v131_v20 = vmul.f32 %v130_v18, %v366_v43  ;;  %v186_v31 = vsel %vm166_vm1, %v184_v29, 0.0 }
 0x110   :  { %v157_v24 = vsel %vm156_vm7, %v364_v42, %v155_v19 }
 0x111   :  { %v133_v25 = vsel %vm132_vm8, %v366_v43, %v131_v20  ;;  %v160_v26 = vsel %vm158_vm9, %v159_v21, %v157_v24 }
 0x112   :  { %v136_v27 = vsel %vm134_vm10, %v135_v23, %v133_v25 }
 0x113   :  { %v162_v28 = vsub.f32 %v136_v27, %v160_v26 }
 0x115   :  { %v185_v30 = vmul.f32 %v162_v28, %v162_v28 }
 0x117   :  { %v187_v32 = vsel %vm166_vm1, %v185_v30, 0.0 }
 0x118   :  { %v188_v33 = vadd.f32 %v187_v32, %v186_v31 }
 0x11a   :  { %189 = vadd.xlane.f32.xlu0 %v188_v33 }
 0x140   :  { %s253_s0 = spop %252 }
 0x141   :  { %v179_v35 = vstv %s253_s0 }
 0x142   :  { %v180_v36 = vadd.f32 %v179_v35, %v163_v34 }
 0x144   :  { %182 = vst.msk [vmem:[#allocation2] sm:$0x1] %vm63_vm2, %v180_v36 }
 0x14b   :  { %v204_v37 = vld [vmem:[#allocation2] sm:$0x1] }
 0x14c   :  { %205 = vst.msk [vmem:[#allocation4] sm:$0x1] %vm63_vm2, %v204_v37 }
 0x14d   :  { %218 = dma.vmem_to_hbm [thread:$0]  %s214_s23, 16, %s216_s21, [#allocation5]  }
 0x18d   :  { %v190_v38 = vpop.xlane.xlu0 %189 }
 0x18e   :  { %v191_v39 = vrot.slane %v190_v38, 4 }
 0x190   :  { %v192_v40 = vadd.f32 %v191_v39, %v190_v38 }
 0x192   :  { %v193_v41 = vrot.slane %v192_v40, 2 }
 0x194   :  { %v194_v42 = vadd.f32 %v193_v41, %v192_v40 }
 0x196   :  { %v195_v43 = vrot.slane %v194_v42, 1 }
 0x198   :  { %v196_v44 = vadd.f32 %v195_v43, %v194_v42 }
 0x19a   :  { %254 = vpush %v196_v44 }
 0x1cb   :  { %s255_s24 = spop %254 }
 0x1cc   :  { %v198_v46 = vstv %s255_s24 }
 0x1cd   :  { %v199_v47 = vadd.f32 %v198_v46, %v183_v45 }
 0x1cf   :  { %200 = vst.msk [vmem:[#allocation3] sm:$0x1] %vm63_vm2, %v199_v47 }
 0x1d6   :  { %v206_v48 = vld [vmem:[#allocation3] sm:$0x1] }
 0x1d7   :  { %207 = vst.msk [vmem:[#allocation6] sm:$0x1] %vm63_vm2, %v206_v48 }
 0x1d8   :  { %229 = dma.vmem_to_hbm [thread:$0]  %s225_s25, 16, %s227_s28, [#allocation7]  }
 0x1d9   :  { %315 = dma.done.wait [#allocation5], 16  }
 0x1da   :  { %316 = vsyncadd [#allocation5], 4294967280 }
 0x1db   :  { %317 = dma.done.wait [#allocation7], 16  }
 0x1dc   :  { %318 = vsyncadd [#allocation7], 4294967280 }
 0x1dd   :  { %238 = vsyncpa [#allocation5], 1 }
 0x1de   :  { %239 = vsyncpa [#allocation7], 1 }

// kernel: adain_loss.2
= control target key start
LH: loop header
LB: loop body
LE: loop exit
PB: predicated region body
PF: predicated region fallthrough
CT: control target
= control target key end

     0   :  { %s199_s0 = inlined_call_operand.vmem [shape: f32[4,512], index: 0, kind: input, shape index: {}]   ;;  %s200_s1 = inlined_call_operand.vmem [shape: f32[4,512], index: 1, kind: input, shape index: {}]   ;;  %s201_s2 = inlined_call_operand.hbm [shape: f32[1,1], index: 2, kind: output, shape index: {}]  }
   0x1   :  { %v58_v0 = vld [vmem:[%s199_s0] sm:$0xff]  ;;  %v59_v1 = vld [vmem:[%s199_s0 + $0x8] sm:$0xff] }
   0x2   :  { %v60_v2 = vld [vmem:[%s200_s1] sm:$0xff]  ;;  %v61_v3 = vld [vmem:[%s200_s1 + $0x8] sm:$0xff] }
   0x3   :  { %v62_v4 = vsub.f32 %v58_v0, %v60_v2 }
   0x4   :  { %7 = vsyncpa [#allocation4], 0  ;;  %v63_v5 = vsub.f32 %v59_v1, %v61_v3  ;;  %vm80_vm0 = vcmask 1043456   ;;  %vm56_vm1 = vcmask 0   ;;  %v164_v19 = vmov 0.0   ;;  %s165_s1 = smov [#allocation3]  }
   0x5   :  { %v65_v6 = vmul.f32 %v62_v4, %v62_v4  ;;  %57 = vst.msk [vmem:[#allocation2] sm:$0x1] %vm56_vm1, %v164_v19  ;;  %s111_s17 = sshll.u32 %s165_s1, 4  ;;  %s113_s20 = sshll.u32 %s201_s2, 4  ;;  %s112_s17 = int_to_ptr.vmem [resolvable:$true] %s111_s17  ;;  %s114_s20 = int_to_ptr.hbm [resolvable:$true] %s113_s20 }
   0x6   :  { %v66_v7 = vmul.f32 %v63_v5, %v63_v5 }
   0x7   :  { %69 = vst [vmem:[#allocation1] ss:$2 sm:$0xff] %v65_v6 }
   0x8   :  { %71 = vst [vmem:[#allocation1 + $0x10] ss:$2 sm:$0xff] %v66_v7 }
   0xc   :  { %v64_v27 = vld [vmem:[#allocation2] sm:$0x1] }
   0xe   :  { %v72_v8 = vld.sshfl [vmem:[#allocation1] sm:$0xff pattern:$0x75316420]  ;;  %v73_v9 = vld.sshfl [vmem:[#allocation1 + $0x8] sm:$0xff pattern:$0x75316420] }
   0xf   :  { %v74_v10 = vld.sshfl [vmem:[#allocation1 + $0x10] sm:$0xff pattern:$0x75316420]  ;;  %v75_v11 = vld.sshfl [vmem:[#allocation1 + $0x18] sm:$0xff pattern:$0x75316420] }
  0x10   :  { %v81_v12 = vsel %vm80_vm0, %v72_v8, 0.0  ;;  %v82_v13 = vsel %vm80_vm0, %v73_v9, 0.0  ;;  %v84_v14 = vsel %vm80_vm0, %v74_v10, 0.0  ;;  %v86_v16 = vsel %vm80_vm0, %v75_v11, 0.0 }
  0x11   :  { %v83_v15 = vadd.f32 %v82_v13, %v81_v12 }
  0x13   :  { %v85_v17 = vadd.f32 %v84_v14, %v83_v15 }
  0x15   :  { %v87_v18 = vadd.f32 %v86_v16, %v85_v17 }
  0x17   :  { %88 = vadd.xlane.f32.xlu0 %v87_v18 }
  0x8a   :  { %v89_v20 = vpop.xlane.xlu0 %88 }
  0x8b   :  { %v90_v21 = vrot.slane %v89_v20, 4 }
  0x8d   :  { %v91_v22 = vadd.f32 %v90_v21, %v89_v20 }
  0x8f   :  { %v92_v23 = vrot.slane %v91_v22, 2 }
  0x91   :  { %v93_v24 = vadd.f32 %v92_v23, %v91_v22 }
  0x93   :  { %v94_v25 = vrot.slane %v93_v24, 1 }
  0x95   :  { %v95_v26 = vadd.f32 %v94_v25, %v93_v24 }
  0x97   :  { %134 = vpush %v95_v26 }
  0xc8   :  { %s135_s0 = spop %134 }
  0xc9   :  { %v97_v28 = vstv %s135_s0 }
  0xca   :  { %v98_v29 = vadd.f32 %v97_v28, %v64_v27 }
  0xcc   :  { %100 = vst.msk [vmem:[#allocation2] sm:$0x1] %vm56_vm1, %v98_v29 }
  0xd3   :  { %v104_v30 = vld [vmem:[#allocation2] sm:$0x1] }
  0xd4   :  { %105 = vst.msk [vmem:[#allocation3] sm:$0x1] %vm56_vm1, %v104_v30 }
  0xd5   :  { %116 = dma.vmem_to_hbm [thread:$0]  %s112_s17, 16, %s114_s20, [#allocation4]  }
  0xd6   :  { %162 = dma.done.wait [#allocation4], 16  }
  0xd7   :  { %163 = vsyncadd [#allocation4], 4294967280 }
  0xd8   :  { %121 = vsyncpa [#allocation4], 1 }

</bundles_post_ra>
